<compile_context>
chip_gen: v5e
topology: v5e:2x2
jax: 0.10.0
libtpu: 0.0.40
codegen_flags: <defaults>
</compile_context>

<pallas_src>
import functools

import jax
import jax.numpy as jnp
from jax.experimental import pallas as pl
from jax.experimental.pallas import tpu as pltpu


_LANE = 128


def _round_up(x, m):
    return ((x + m - 1) // m) * m


def _cdiv(a, b):
    return -(-a // b)


def _pick_tile(dim, want):
    """Largest multiple of 128 that divides `dim` (dim is a multiple of 128) and is <= want."""
    t = max(_LANE, (min(want, dim) // _LANE) * _LANE)
    while dim % t:
        t -= _LANE
    return t


def _vmem_capacity_bytes():
    try:
        return int(pltpu.get_tpu_info().vmem_capacity_bytes)
    except Exception:
        return 64 << 20          # conservative (v7x-sized) fallback


def _min_batch_grid_steps():
    # v7x has 2 TensorCores/chip: make sure the "parallel" batch axis has >= 2 grid steps
    # there so both cores get work.  v5e/v6e (1 TC) keep a single step for small batches.
    try:
        if "v7" in jax.devices()[0].device_kind.lower():
            return 2
    except Exception:
        pass
    return 1


# ------------------------------- Activations ------------------------------- #

def _act_ref(y, non_linearity):
    if non_linearity == "Identity":
        return y
    if non_linearity == "ReLU":
        return jnp.maximum(y, 0.0)
    if non_linearity == "Sigmoid":
        return jax.nn.sigmoid(y)
    if non_linearity == "Tanh":
        return jnp.tanh(y)
    raise ValueError(f"Unsupported non_linearity: {non_linearity}")


def _act_kernel(y, non_linearity, approx):
    if non_linearity == "Identity":
        return y
    if non_linearity == "ReLU":
        return jnp.maximum(y, 0.0)
    if non_linearity == "Sigmoid":
        # exp + reciprocal both run on the EUP slot, keeping the activation off the VALU.
        return pl.reciprocal(1.0 + jnp.exp(-y), approx=approx)
    if non_linearity == "Tanh":
        return jnp.tanh(y)
    raise ValueError(f"Unsupported non_linearity: {non_linearity}")


# ----------------------------- Fused Pallas kernel ----------------------------- #

def _fused_mlp_kernel(*refs, n_layers, bias_flags, non_linearity, compute_dtype, approx_act):
    """refs = [x_ref, (w0, b0?), (w1, b1?), ..., o_ref].

    x_ref: (TM, K0p) compute_dtype; wi: (Kip, Nip) compute_dtype; bi: (1, Nip) f32;
    o_ref: (TM, Nlast_p).  Matmuls accumulate in f32 on the MXU; bias/activation applied in
    f32, then cast; intermediate activations stay on-chip.
    """
    x_ref = refs[0]
    o_ref = refs[-1]
    idx = 1
    a = x_ref[...]
    if a.dtype != compute_dtype:
        a = a.astype(compute_dtype)
    for li in range(n_layers):
        w = refs[idx][...]
        idx += 1
        y = jnp.dot(a, w, preferred_element_type=jnp.float32)
        if bias_flags[li]:
            y = y + refs[idx][...]
            idx += 1
        y = _act_kernel(y, non_linearity, approx_act)
        if li + 1 < n_layers:
            a = y.astype(compute_dtype)
        else:
            o_ref[...] = y.astype(o_ref.dtype)


# -------------------- K/N-tiled per-layer fallback kernel -------------------- #

def _tiled_layer_kernel(x_ref, w_ref, *rest, use_bias, non_linearity, approx_act):
    """One Linear(+bias)+activation layer, tiled over (M, N, K) with f32 accumulator."""
    if use_bias:
        b_ref, o_ref, acc_ref = rest
    else:
        o_ref, acc_ref = rest
    k = pl.program_id(2)

    @pl.when(k == 0)
    def _():
        acc_ref[...] = jnp.zeros_like(acc_ref)

    acc_ref[...] += jnp.dot(x_ref[...], w_ref[...], preferred_element_type=jnp.float32)

    @pl.when(k == pl.num_programs(2) - 1)
    def _():
        y = acc_ref[...]
        if use_bias:
            y = y + b_ref[...]
        y = _act_kernel(y, non_linearity, approx_act)
        o_ref[...] = y.astype(o_ref.dtype)


# ------------------------------ Wrapper / builder ------------------------------ #

def make_fused_mlp(params, non_linearity="Identity", compute_dtype=None, tm=512,
                   force_tiled=False):
    """Pad/convert parameters ONCE and return a forward(x) callable.

    compute_dtype=None -> bf16 (native MXU dtype on v5e/v6e/v7x; halves weight VMEM
    residency which is the binding constraint on v7x).
    """
    if compute_dtype is None:
        compute_dtype = jnp.bfloat16
    compute_dtype = jnp.dtype(compute_dtype)
    cbytes = compute_dtype.itemsize

    n_layers = len(params)
    bias_flags = tuple(bool(p["use_bias"]) for p in params)
    dims = [params[0]["w_t"].shape[0]] + [p["w_t"].shape[1] for p in params]
    padded = [_round_up(d, _LANE) for d in dims]       # lane-dense feature dims
    max_pad = max(padded)

    # Pre-padded / pre-cast parameters (weights in compute_dtype, biases in f32).
    ws, bs, ops = [], [], []
    for li, p in enumerate(params):
        k, n = p["w_t"].shape
        kp, np_ = padded[li], padded[li + 1]
        w_pad = jnp.zeros((kp, np_), compute_dtype).at[:k, :n].set(
            p["w_t"].astype(compute_dtype))
        ws.append(w_pad)
        ops.append(w_pad)
        if bias_flags[li]:
            b_pad = jnp.zeros((1, np_), jnp.float32).at[0, :n].set(
                p["b"].astype(jnp.float32))
            bs.append(b_pad)
            ops.append(b_pad)
        else:
            bs.append(None)

    weight_bytes = sum(padded[i] * padded[i + 1] * cbytes for i in range(n_layers))
    bias_bytes = sum(4 * padded[i + 1] for i in range(n_layers) if bias_flags[i])
    param_bytes = weight_bytes + bias_bytes

    approx_act = (compute_dtype == jnp.bfloat16)
    fused_kernel = functools.partial(
        _fused_mlp_kernel, n_layers=n_layers, bias_flags=bias_flags,
        non_linearity=non_linearity, compute_dtype=compute_dtype, approx_act=approx_act)

    in_dims, out_dims = dims[0], dims[-1]
    kp0, np_last = padded[0], padded[-1]
    row_align = 16 if compute_dtype == jnp.bfloat16 else 8   # bf16 native tile is (16,128)

    vmem_cap = _vmem_capacity_bytes()
    vmem_budget = int(vmem_cap * 0.82)          # headroom for compiler scratch
    min_steps = _min_batch_grid_steps()

    def _fused_footprint(TM, weight_factor):
        return (weight_factor * param_bytes
                + 2 * TM * kp0 * cbytes              # double-buffered x tile
                + 2 * TM * np_last * 4               # double-buffered out tile
                + 2 * TM * max_pad * (4 + cbytes))   # f32 MXU result + cast activation

    state = {"mode": None}    # None | "buffered1" | "plain" | "tiled"

    def _fused_call(x_pad, TM, Mp, out_dtype, single_buffer):
        wf = 1 if single_buffer else 2
        vmem_limit = int(min(vmem_cap * 0.9,
                             max(32 << 20, _fused_footprint(TM, wf) + (8 << 20))))
        in_specs = [pl.BlockSpec((TM, kp0), lambda i: (i, 0))]
        for a in ops:
            if single_buffer:
                # Grid-invariant parameter block: request a SINGLE VMEM buffer instead of
                # the default double-buffer (halves resident parameter VMEM).
                in_specs.append(pl.BlockSpec(a.shape, lambda i: (0, 0),
                                             pipeline_mode=pl.Buffered(1)))
            else:
                in_specs.append(pl.BlockSpec(a.shape, lambda i: (0, 0)))
        flops = 2 * Mp * sum(padded[i] * padded[i + 1] for i in range(n_layers))
        transc = Mp * sum(padded[1:]) if non_linearity in ("Sigmoid", "Tanh") else 0
        bytes_acc = (Mp * kp0 * cbytes + param_bytes
                     + Mp * np_last * jnp.dtype(out_dtype).itemsize)
        return pl.pallas_call(
            fused_kernel,
            out_shape=jax.ShapeDtypeStruct((Mp, np_last), out_dtype),
            grid=(Mp // TM,),
            in_specs=in_specs,
            out_specs=pl.BlockSpec((TM, np_last), lambda i: (i, 0)),
            compiler_params=pltpu.CompilerParams(
                dimension_semantics=("parallel",),
                vmem_limit_bytes=vmem_limit),
            cost_estimate=pl.CostEstimate(flops=flops, transcendentals=transc,
                                          bytes_accessed=bytes_acc),
        )(x_pad, *ops)

    def _tiled_layer(a, w_pad, b_pad, out_dtype, TM):
        Mp, Kp = a.shape
        Np = w_pad.shape[1]
        tk = _pick_tile(Kp, 512)
        tn = _pick_tile(Np, 512)
        use_bias = b_pad is not None
        kern = functools.partial(_tiled_layer_kernel, use_bias=use_bias,
                                 non_linearity=non_linearity, approx_act=approx_act)
        in_specs = [pl.BlockSpec((TM, tk), lambda i, j, k: (i, k)),
                    pl.BlockSpec((tk, tn), lambda i, j, k: (k, j))]
        args = [a, w_pad]
        if use_bias:
            in_specs.append(pl.BlockSpec((1, tn), lambda i, j, k: (0, j)))
            args.append(b_pad)
        ob = jnp.dtype(out_dtype).itemsize
        footprint = (2 * (TM * tk * cbytes + tk * tn * cbytes + tn * 4 + TM * tn * ob)
                     + TM * tn * 4 + (4 << 20))
        vmem_limit = int(min(vmem_cap * 0.9, max(32 << 20, footprint)))
        return pl.pallas_call(
            kern,
            out_shape=jax.ShapeDtypeStruct((Mp, Np), out_dtype),
            grid=(Mp // TM, Np // tn, Kp // tk),
            in_specs=in_specs,
            out_specs=pl.BlockSpec((TM, tn), lambda i, j, k: (i, j)),
            scratch_shapes=[pltpu.VMEM((TM, tn), jnp.float32)],
            compiler_params=pltpu.CompilerParams(
                dimension_semantics=("parallel", "parallel", "arbitrary"),
                vmem_limit_bytes=vmem_limit),
        )(*args)

    def _tiled_forward(x_pad, TM, out_dtype):
        a = x_pad
        for li in range(n_layers):
            is_last = (li == n_layers - 1)
            a = _tiled_layer(a, ws[li], bs[li],
                             out_dtype if is_last else compute_dtype, TM)
        return a

    def forward(x):
        lead = x.shape[:-1]
        assert x.shape[-1] == in_dims, (x.shape, in_dims)
        x2 = x.reshape(-1, in_dims)
        M = x2.shape[0]
        out_dtype = x.dtype

        # Batch tiling: fixed TM aligned to the compute dtype's native sublane tile.
        Mp = _round_up(M, row_align)
        TM = _round_up(min(tm, Mp), row_align)
        if min_steps > 1 and Mp > min_steps * row_align and _cdiv(Mp, TM) < min_steps:
            TM = _round_up(_cdiv(Mp, min_steps), row_align)   # keep both v7x TCs busy
        while TM > row_align and _fused_footprint(TM, 1) > vmem_budget:
            TM = max(row_align, _round_up(TM // 2, row_align))
        Mp = _round_up(Mp, TM)

        # Pad/cast the input only when actually needed (aligned inputs stream directly).
        if M == Mp and in_dims == kp0 and x2.dtype == compute_dtype:
            x_pad = x2
        else:
            x_pad = jnp.zeros((Mp, kp0), compute_dtype).at[:M, :in_dims].set(
                x2.astype(compute_dtype))

        fused_ok = (not force_tiled and state["mode"] != "tiled"
                    and _fused_footprint(row_align, 1) <= vmem_budget)
        out = None
        if fused_ok:
            attempts = [state["mode"]] if state["mode"] else ["buffered1", "plain"]
            for mode in attempts:
                try:
                    out = _fused_call(x_pad, TM, Mp, out_dtype,
                                      single_buffer=(mode == "buffered1"))
                    state["mode"] = mode
                    break
                except Exception:
                    state["mode"] = None
        if out is None:
            # Per-layer K/N-tiled fallback: parameters don't fit VMEM (e.g. wide nets on
            # v7x's 64 MiB), or the fused lowering was rejected on this backend.
            state["mode"] = "tiled"
            out = _tiled_forward(x_pad, TM, out_dtype)

        if Mp != M or np_last != out_dims:
            out = out[:M, :out_dims]
        return out.reshape(*lead, out_dims)

    return forward


# ------------------------------ Parameter handling ------------------------------ #

def init_fcnn_params(key, in_dims, out_dims, hidden_dim, n_hidden_layers,
                     with_bias=True, final_bias=True):
    """Deterministic init mimicking nn.Linear's U(-1/sqrt(fan_in), 1/sqrt(fan_in)).

    Weights are stored PRE-TRANSPOSED as (in, out) so the forward computes y = x @ w_t + b
    with no per-call transpose.
    """
    layer_dims = (
        [(in_dims, hidden_dim)]
        + [(hidden_dim, hidden_dim)] * n_hidden_layers
        + [(hidden_dim, out_dims)]
    )
    params = []
    for li, (din, dout) in enumerate(layer_dims):
        key, kw, kb = jax.random.split(key, 3)
        bound = 1.0 / (din ** 0.5)
        w_t = jax.random.uniform(kw, (din, dout), jnp.float32, -bound, bound)
        use_bias = final_bias if li == len(layer_dims) - 1 else with_bias
        b = (jax.random.uniform(kb, (dout,), jnp.float32, -bound, bound)
             if use_bias else None)
        params.append({"w_t": w_t, "b": b, "use_bias": use_bias})
    return params


def fcnn_forward_ref(params, x, non_linearity="Identity"):
    """Plain-JAX reference (activation after every layer, like the PyTorch module)."""
    for p in params:
        x = x @ p["w_t"]
        if p["use_bias"]:
            x = x + p["b"]
        x = _act_ref(x, non_linearity)
    return x


# ------------------------------------- Main ------------------------------------- #

if __name__ == "__main__":
    key = jax.random.PRNGKey(0)
    k_param, k_x = jax.random.split(key)

    batch = 8
    in_dims = 16
    hidden_dim = 32
    out_dims = 8
    n_hidden_layers = 2
    non_linearity = "ReLU"   # module default is "Identity"; ReLU exercises the activation path

    params = init_fcnn_params(
        k_param, in_dims, out_dims, hidden_dim, n_hidden_layers,
        with_bias=True, final_bias=True,
    )
    x = jax.random.normal(k_x, (batch, in_dims), jnp.float32)
    y_ref = fcnn_forward_ref(params, x, non_linearity=non_linearity)

    # Fused single-kernel forward, f32 compute (tight correctness check).
    fwd_f32 = make_fused_mlp(params, non_linearity=non_linearity,
                             compute_dtype=jnp.float32)
    y = jax.block_until_ready(fwd_f32(x))
    assert y.shape == (batch, out_dims), y.shape
    assert jnp.allclose(y, y_ref, atol=1e-5, rtol=1e-5), "f32 mismatch vs reference"

    # Default path: bf16 weights/activations on the MXU with f32 accumulation (looser check).
    fwd_bf16 = make_fused_mlp(params, non_linearity=non_linearity)
    y_b = jax.block_until_ready(fwd_bf16(x))
    assert y_b.shape == (batch, out_dims), y_b.shape
    assert jnp.allclose(y_b, y_ref, atol=5e-2, rtol=5e-2), "bf16 mismatch vs reference"

    # K/N-tiled fallback path (forced), verifies the large-model / v7x path also runs.
    fwd_tiled = make_fused_mlp(params, non_linearity=non_linearity,
                               compute_dtype=jnp.float32, force_tiled=True)
    y_t = jax.block_until_ready(fwd_tiled(x))
    assert y_t.shape == (batch, out_dims), y_t.shape
    assert jnp.allclose(y_t, y_ref, atol=1e-5, rtol=1e-5), "tiled mismatch vs reference"

    print("KERNEL_OK")
</pallas_src>

<mosaic_0001>
module attributes {stable_mosaic.version = 11 : i64} {
  func.func @_fused_mlp_kernel(%arg0: i32, %arg1: memref<8x128xf32, #tpu.memory_space<vmem>>, %arg2: memref<128x128xf32, #tpu.memory_space<vmem>>, %arg3: memref<1x128xf32, #tpu.memory_space<vmem>>, %arg4: memref<128x128xf32, #tpu.memory_space<vmem>>, %arg5: memref<1x128xf32, #tpu.memory_space<vmem>>, %arg6: memref<128x128xf32, #tpu.memory_space<vmem>>, %arg7: memref<1x128xf32, #tpu.memory_space<vmem>>, %arg8: memref<128x128xf32, #tpu.memory_space<vmem>>, %arg9: memref<1x128xf32, #tpu.memory_space<vmem>>, %arg10: memref<8x128xf32, #tpu.memory_space<vmem>>) attributes {dimension_semantics = [#tpu.dimension_semantics<parallel>], iteration_bounds = array<i64: 1>, scalar_prefetch = 0 : i64, scratch_operands = 0 : i64, tpu.core_type = #tpu.core_type<tc>, window_params = [{transform_indices = @transform_0, window_bounds = array<i64: 8, 128>}, {pipeline_mode = #tpu.pipeline_mode<synchronous>, transform_indices = @transform_1, window_bounds = array<i64: 128, 128>}, {pipeline_mode = #tpu.pipeline_mode<synchronous>, transform_indices = @transform_2, window_bounds = array<i64: 1, 128>}, {pipeline_mode = #tpu.pipeline_mode<synchronous>, transform_indices = @transform_3, window_bounds = array<i64: 128, 128>}, {pipeline_mode = #tpu.pipeline_mode<synchronous>, transform_indices = @transform_4, window_bounds = array<i64: 1, 128>}, {pipeline_mode = #tpu.pipeline_mode<synchronous>, transform_indices = @transform_5, window_bounds = array<i64: 128, 128>}, {pipeline_mode = #tpu.pipeline_mode<synchronous>, transform_indices = @transform_6, window_bounds = array<i64: 1, 128>}, {pipeline_mode = #tpu.pipeline_mode<synchronous>, transform_indices = @transform_7, window_bounds = array<i64: 128, 128>}, {pipeline_mode = #tpu.pipeline_mode<synchronous>, transform_indices = @transform_8, window_bounds = array<i64: 1, 128>}, {transform_indices = @transform_9, window_bounds = array<i64: 8, 128>}]} {
    %c0 = arith.constant 0 : index
    %c0_0 = arith.constant 0 : index
    %0 = vector.load %arg1[%c0, %c0_0] : memref<8x128xf32, #tpu.memory_space<vmem>>, vector<8x128xf32>
    %c0_1 = arith.constant 0 : index
    %c0_2 = arith.constant 0 : index
    %1 = vector.load %arg2[%c0_1, %c0_2] : memref<128x128xf32, #tpu.memory_space<vmem>>, vector<128x128xf32>
    %cst = arith.constant dense<0.000000e+00> : vector<8x128xf32>
    %2 = tpu.matmul %0, %1, %cst {dimension_numbers = #tpu.dot_dimension_numbers<[1], [0], [0], [1], [0, 0, 1, 1], [], []>} : vector<8x128xf32>, vector<128x128xf32>, vector<8x128xf32> -> vector<8x128xf32>
    %c0_3 = arith.constant 0 : index
    %c0_4 = arith.constant 0 : index
    %3 = vector.load %arg3[%c0_3, %c0_4] : memref<1x128xf32, #tpu.memory_space<vmem>>, vector<1x128xf32>
    %4 = vector.broadcast %3 : vector<1x128xf32> to vector<8x128xf32>
    %5 = arith.addf %2, %4 : vector<8x128xf32>
    %cst_5 = arith.constant 0.000000e+00 : f32
    %6 = vector.broadcast %cst_5 : f32 to vector<8x128xf32>
    %7 = arith.maximumf %5, %6 : vector<8x128xf32>
    %c0_6 = arith.constant 0 : index
    %c0_7 = arith.constant 0 : index
    %8 = vector.load %arg4[%c0_6, %c0_7] : memref<128x128xf32, #tpu.memory_space<vmem>>, vector<128x128xf32>
    %cst_8 = arith.constant dense<0.000000e+00> : vector<8x128xf32>
    %9 = tpu.matmul %7, %8, %cst_8 {dimension_numbers = #tpu.dot_dimension_numbers<[1], [0], [0], [1], [0, 0, 1, 1], [], []>} : vector<8x128xf32>, vector<128x128xf32>, vector<8x128xf32> -> vector<8x128xf32>
    %c0_9 = arith.constant 0 : index
    %c0_10 = arith.constant 0 : index
    %10 = vector.load %arg5[%c0_9, %c0_10] : memref<1x128xf32, #tpu.memory_space<vmem>>, vector<1x128xf32>
    %11 = vector.broadcast %10 : vector<1x128xf32> to vector<8x128xf32>
    %12 = arith.addf %9, %11 : vector<8x128xf32>
    %cst_11 = arith.constant 0.000000e+00 : f32
    %13 = vector.broadcast %cst_11 : f32 to vector<8x128xf32>
    %14 = arith.maximumf %12, %13 : vector<8x128xf32>
    %c0_12 = arith.constant 0 : index
    %c0_13 = arith.constant 0 : index
    %15 = vector.load %arg6[%c0_12, %c0_13] : memref<128x128xf32, #tpu.memory_space<vmem>>, vector<128x128xf32>
    %cst_14 = arith.constant dense<0.000000e+00> : vector<8x128xf32>
    %16 = tpu.matmul %14, %15, %cst_14 {dimension_numbers = #tpu.dot_dimension_numbers<[1], [0], [0], [1], [0, 0, 1, 1], [], []>} : vector<8x128xf32>, vector<128x128xf32>, vector<8x128xf32> -> vector<8x128xf32>
    %c0_15 = arith.constant 0 : index
    %c0_16 = arith.constant 0 : index
    %17 = vector.load %arg7[%c0_15, %c0_16] : memref<1x128xf32, #tpu.memory_space<vmem>>, vector<1x128xf32>
    %18 = vector.broadcast %17 : vector<1x128xf32> to vector<8x128xf32>
    %19 = arith.addf %16, %18 : vector<8x128xf32>
    %cst_17 = arith.constant 0.000000e+00 : f32
    %20 = vector.broadcast %cst_17 : f32 to vector<8x128xf32>
    %21 = arith.maximumf %19, %20 : vector<8x128xf32>
    %c0_18 = arith.constant 0 : index
    %c0_19 = arith.constant 0 : index
    %22 = vector.load %arg8[%c0_18, %c0_19] : memref<128x128xf32, #tpu.memory_space<vmem>>, vector<128x128xf32>
    %cst_20 = arith.constant dense<0.000000e+00> : vector<8x128xf32>
    %23 = tpu.matmul %21, %22, %cst_20 {dimension_numbers = #tpu.dot_dimension_numbers<[1], [0], [0], [1], [0, 0, 1, 1], [], []>} : vector<8x128xf32>, vector<128x128xf32>, vector<8x128xf32> -> vector<8x128xf32>
    %c0_21 = arith.constant 0 : index
    %c0_22 = arith.constant 0 : index
    %24 = vector.load %arg9[%c0_21, %c0_22] : memref<1x128xf32, #tpu.memory_space<vmem>>, vector<1x128xf32>
    %25 = vector.broadcast %24 : vector<1x128xf32> to vector<8x128xf32>
    %26 = arith.addf %23, %25 : vector<8x128xf32>
    %cst_23 = arith.constant 0.000000e+00 : f32
    %27 = vector.broadcast %cst_23 : f32 to vector<8x128xf32>
    %28 = arith.maximumf %26, %27 : vector<8x128xf32>
    %c0_24 = arith.constant 0 : index
    %c0_25 = arith.constant 0 : index
    %29 = vector.load %arg10[%c0_24, %c0_25] : memref<8x128xf32, #tpu.memory_space<vmem>>, vector<8x128xf32>
    tpu.vector_store %arg10[%c0_24, %c0_25], %28 {strides = array<i32>} : memref<8x128xf32, #tpu.memory_space<vmem>>, vector<8x128xf32>,
    return
  }
  func.func @transform_0(%arg0: i32) -> (i32, i32) {
    %c0_i32 = arith.constant 0 : i32
    %c0_i32_0 = arith.constant 0 : i32
    return %arg0, %c0_i32 : i32, i32
  }
  func.func @transform_1(%arg0: i32) -> (i32, i32) {
    %c0_i32 = arith.constant 0 : i32
    %c0_i32_0 = arith.constant 0 : i32
    %c0_i32_1 = arith.constant 0 : i32
    return %c0_i32, %c0_i32_0 : i32, i32
  }
  func.func @transform_2(%arg0: i32) -> (i32, i32) {
    %c0_i32 = arith.constant 0 : i32
    %c0_i32_0 = arith.constant 0 : i32
    %c0_i32_1 = arith.constant 0 : i32
    return %c0_i32, %c0_i32_0 : i32, i32
  }
  func.func @transform_3(%arg0: i32) -> (i32, i32) {
    %c0_i32 = arith.constant 0 : i32
    %c0_i32_0 = arith.constant 0 : i32
    %c0_i32_1 = arith.constant 0 : i32
    return %c0_i32, %c0_i32_0 : i32, i32
  }
  func.func @transform_4(%arg0: i32) -> (i32, i32) {
    %c0_i32 = arith.constant 0 : i32
    %c0_i32_0 = arith.constant 0 : i32
    %c0_i32_1 = arith.constant 0 : i32
    return %c0_i32, %c0_i32_0 : i32, i32
  }
  func.func @transform_5(%arg0: i32) -> (i32, i32) {
    %c0_i32 = arith.constant 0 : i32
    %c0_i32_0 = arith.constant 0 : i32
    %c0_i32_1 = arith.constant 0 : i32
    return %c0_i32, %c0_i32_0 : i32, i32
  }
  func.func @transform_6(%arg0: i32) -> (i32, i32) {
    %c0_i32 = arith.constant 0 : i32
    %c0_i32_0 = arith.constant 0 : i32
    %c0_i32_1 = arith.constant 0 : i32
    return %c0_i32, %c0_i32_0 : i32, i32
  }
  func.func @transform_7(%arg0: i32) -> (i32, i32) {
    %c0_i32 = arith.constant 0 : i32
    %c0_i32_0 = arith.constant 0 : i32
    %c0_i32_1 = arith.constant 0 : i32
    return %c0_i32, %c0_i32_0 : i32, i32
  }
  func.func @transform_8(%arg0: i32) -> (i32, i32) {
    %c0_i32 = arith.constant 0 : i32
    %c0_i32_0 = arith.constant 0 : i32
    %c0_i32_1 = arith.constant 0 : i32
    return %c0_i32, %c0_i32_0 : i32, i32
  }
  func.func @transform_9(%arg0: i32) -> (i32, i32) {
    %c0_i32 = arith.constant 0 : i32
    %c0_i32_0 = arith.constant 0 : i32
    return %arg0, %c0_i32 : i32, i32
  }
}

module attributes {stable_mosaic.version = 11 : i64} {
  func.func @_fused_mlp_kernel(%arg0: i32, %arg1: memref<8x128xf32, #tpu.memory_space<vmem>>, %arg2: memref<128x128xf32, #tpu.memory_space<vmem>>, %arg3: memref<1x128xf32, #tpu.memory_space<vmem>>, %arg4: memref<128x128xf32, #tpu.memory_space<vmem>>, %arg5: memref<1x128xf32, #tpu.memory_space<vmem>>, %arg6: memref<128x128xf32, #tpu.memory_space<vmem>>, %arg7: memref<1x128xf32, #tpu.memory_space<vmem>>, %arg8: memref<128x128xf32, #tpu.memory_space<vmem>>, %arg9: memref<1x128xf32, #tpu.memory_space<vmem>>, %arg10: memref<8x128xf32, #tpu.memory_space<vmem>>) attributes {dimension_semantics = [#tpu.dimension_semantics<parallel>], iteration_bounds = array<i64: 1>, scalar_prefetch = 0 : i64, scratch_operands = 0 : i64, tpu.core_type = #tpu.core_type<tc>, window_params = [{transform_indices = @transform_0, window_bounds = array<i64: 8, 128>}, {pipeline_mode = #tpu.pipeline_mode<synchronous>, transform_indices = @transform_1, window_bounds = array<i64: 128, 128>}, {pipeline_mode = #tpu.pipeline_mode<synchronous>, transform_indices = @transform_2, window_bounds = array<i64: 1, 128>}, {pipeline_mode = #tpu.pipeline_mode<synchronous>, transform_indices = @transform_3, window_bounds = array<i64: 128, 128>}, {pipeline_mode = #tpu.pipeline_mode<synchronous>, transform_indices = @transform_4, window_bounds = array<i64: 1, 128>}, {pipeline_mode = #tpu.pipeline_mode<synchronous>, transform_indices = @transform_5, window_bounds = array<i64: 128, 128>}, {pipeline_mode = #tpu.pipeline_mode<synchronous>, transform_indices = @transform_6, window_bounds = array<i64: 1, 128>}, {pipeline_mode = #tpu.pipeline_mode<synchronous>, transform_indices = @transform_7, window_bounds = array<i64: 128, 128>}, {pipeline_mode = #tpu.pipeline_mode<synchronous>, transform_indices = @transform_8, window_bounds = array<i64: 1, 128>}, {transform_indices = @transform_9, window_bounds = array<i64: 8, 128>}]} {
    %c0 = arith.constant 0 : index
    %c0_0 = arith.constant 0 : index
    %0 = vector.load %arg1[%c0, %c0_0] : memref<8x128xf32, #tpu.memory_space<vmem>>, vector<8x128xf32>
    %c0_1 = arith.constant 0 : index
    %c0_2 = arith.constant 0 : index
    %1 = vector.load %arg2[%c0_1, %c0_2] : memref<128x128xf32, #tpu.memory_space<vmem>>, vector<128x128xf32>
    %cst = arith.constant dense<0.000000e+00> : vector<8x128xf32>
    %2 = tpu.matmul %0, %1, %cst {dimension_numbers = #tpu.dot_dimension_numbers<[1], [0], [0], [1], [0, 0, 1, 1], [], []>} : vector<8x128xf32>, vector<128x128xf32>, vector<8x128xf32> -> vector<8x128xf32>
    %c0_3 = arith.constant 0 : index
    %c0_4 = arith.constant 0 : index
    %3 = vector.load %arg3[%c0_3, %c0_4] : memref<1x128xf32, #tpu.memory_space<vmem>>, vector<1x128xf32>
    %4 = vector.broadcast %3 : vector<1x128xf32> to vector<8x128xf32>
    %5 = arith.addf %2, %4 : vector<8x128xf32>
    %cst_5 = arith.constant 0.000000e+00 : f32
    %6 = vector.broadcast %cst_5 : f32 to vector<8x128xf32>
    %7 = arith.maximumf %5, %6 : vector<8x128xf32>
    %c0_6 = arith.constant 0 : index
    %c0_7 = arith.constant 0 : index
    %8 = vector.load %arg4[%c0_6, %c0_7] : memref<128x128xf32, #tpu.memory_space<vmem>>, vector<128x128xf32>
    %cst_8 = arith.constant dense<0.000000e+00> : vector<8x128xf32>
    %9 = tpu.matmul %7, %8, %cst_8 {dimension_numbers = #tpu.dot_dimension_numbers<[1], [0], [0], [1], [0, 0, 1, 1], [], []>} : vector<8x128xf32>, vector<128x128xf32>, vector<8x128xf32> -> vector<8x128xf32>
    %c0_9 = arith.constant 0 : index
    %c0_10 = arith.constant 0 : index
    %10 = vector.load %arg5[%c0_9, %c0_10] : memref<1x128xf32, #tpu.memory_space<vmem>>, vector<1x128xf32>
    %11 = vector.broadcast %10 : vector<1x128xf32> to vector<8x128xf32>
    %12 = arith.addf %9, %11 : vector<8x128xf32>
    %cst_11 = arith.constant 0.000000e+00 : f32
    %13 = vector.broadcast %cst_11 : f32 to vector<8x128xf32>
    %14 = arith.maximumf %12, %13 : vector<8x128xf32>
    %c0_12 = arith.constant 0 : index
    %c0_13 = arith.constant 0 : index
    %15 = vector.load %arg6[%c0_12, %c0_13] : memref<128x128xf32, #tpu.memory_space<vmem>>, vector<128x128xf32>
    %cst_14 = arith.constant dense<0.000000e+00> : vector<8x128xf32>
    %16 = tpu.matmul %14, %15, %cst_14 {dimension_numbers = #tpu.dot_dimension_numbers<[1], [0], [0], [1], [0, 0, 1, 1], [], []>} : vector<8x128xf32>, vector<128x128xf32>, vector<8x128xf32> -> vector<8x128xf32>
    %c0_15 = arith.constant 0 : index
    %c0_16 = arith.constant 0 : index
    %17 = vector.load %arg7[%c0_15, %c0_16] : memref<1x128xf32, #tpu.memory_space<vmem>>, vector<1x128xf32>
    %18 = vector.broadcast %17 : vector<1x128xf32> to vector<8x128xf32>
    %19 = arith.addf %16, %18 : vector<8x128xf32>
    %cst_17 = arith.constant 0.000000e+00 : f32
    %20 = vector.broadcast %cst_17 : f32 to vector<8x128xf32>
    %21 = arith.maximumf %19, %20 : vector<8x128xf32>
    %c0_18 = arith.constant 0 : index
    %c0_19 = arith.constant 0 : index
    %22 = vector.load %arg8[%c0_18, %c0_19] : memref<128x128xf32, #tpu.memory_space<vmem>>, vector<128x128xf32>
    %cst_20 = arith.constant dense<0.000000e+00> : vector<8x128xf32>
    %23 = tpu.matmul %21, %22, %cst_20 {dimension_numbers = #tpu.dot_dimension_numbers<[1], [0], [0], [1], [0, 0, 1, 1], [], []>} : vector<8x128xf32>, vector<128x128xf32>, vector<8x128xf32> -> vector<8x128xf32>
    %c0_21 = arith.constant 0 : index
    %c0_22 = arith.constant 0 : index
    %24 = vector.load %arg9[%c0_21, %c0_22] : memref<1x128xf32, #tpu.memory_space<vmem>>, vector<1x128xf32>
    %25 = vector.broadcast %24 : vector<1x128xf32> to vector<8x128xf32>
    %26 = arith.addf %23, %25 : vector<8x128xf32>
    %cst_23 = arith.constant 0.000000e+00 : f32
    %27 = vector.broadcast %cst_23 : f32 to vector<8x128xf32>
    %28 = arith.maximumf %26, %27 : vector<8x128xf32>
    %c0_24 = arith.constant 0 : index
    %c0_25 = arith.constant 0 : index
    %29 = vector.load %arg10[%c0_24, %c0_25] : memref<8x128xf32, #tpu.memory_space<vmem>>, vector<8x128xf32>
    tpu.vector_store %arg10[%c0_24, %c0_25], %28 {strides = array<i32>} : memref<8x128xf32, #tpu.memory_space<vmem>>, vector<8x128xf32>,
    return
  }
  func.func @transform_0(%arg0: i32) -> (i32, i32) {
    %c0_i32 = arith.constant 0 : i32
    %c0_i32_0 = arith.constant 0 : i32
    return %arg0, %c0_i32 : i32, i32
  }
  func.func @transform_1(%arg0: i32) -> (i32, i32) {
    %c0_i32 = arith.constant 0 : i32
    %c0_i32_0 = arith.constant 0 : i32
    %c0_i32_1 = arith.constant 0 : i32
    return %c0_i32, %c0_i32_0 : i32, i32
  }
  func.func @transform_2(%arg0: i32) -> (i32, i32) {
    %c0_i32 = arith.constant 0 : i32
    %c0_i32_0 = arith.constant 0 : i32
    %c0_i32_1 = arith.constant 0 : i32
    return %c0_i32, %c0_i32_0 : i32, i32
  }
  func.func @transform_3(%arg0: i32) -> (i32, i32) {
    %c0_i32 = arith.constant 0 : i32
    %c0_i32_0 = arith.constant 0 : i32
    %c0_i32_1 = arith.constant 0 : i32
    return %c0_i32, %c0_i32_0 : i32, i32
  }
  func.func @transform_4(%arg0: i32) -> (i32, i32) {
    %c0_i32 = arith.constant 0 : i32
    %c0_i32_0 = arith.constant 0 : i32
    %c0_i32_1 = arith.constant 0 : i32
    return %c0_i32, %c0_i32_0 : i32, i32
  }
  func.func @transform_5(%arg0: i32) -> (i32, i32) {
    %c0_i32 = arith.constant 0 : i32
    %c0_i32_0 = arith.constant 0 : i32
    %c0_i32_1 = arith.constant 0 : i32
    return %c0_i32, %c0_i32_0 : i32, i32
  }
  func.func @transform_6(%arg0: i32) -> (i32, i32) {
    %c0_i32 = arith.constant 0 : i32
    %c0_i32_0 = arith.constant 0 : i32
    %c0_i32_1 = arith.constant 0 : i32
    return %c0_i32, %c0_i32_0 : i32, i32
  }
  func.func @transform_7(%arg0: i32) -> (i32, i32) {
    %c0_i32 = arith.constant 0 : i32
    %c0_i32_0 = arith.constant 0 : i32
    %c0_i32_1 = arith.constant 0 : i32
    return %c0_i32, %c0_i32_0 : i32, i32
  }
  func.func @transform_8(%arg0: i32) -> (i32, i32) {
    %c0_i32 = arith.constant 0 : i32
    %c0_i32_0 = arith.constant 0 : i32
    %c0_i32_1 = arith.constant 0 : i32
    return %c0_i32, %c0_i32_0 : i32, i32
  }
  func.func @transform_9(%arg0: i32) -> (i32, i32) {
    %c0_i32 = arith.constant 0 : i32
    %c0_i32_0 = arith.constant 0 : i32
    return %arg0, %c0_i32 : i32, i32
  }
}

module attributes {stable_mosaic.version = 11 : i64} {
  func.func @_tiled_layer_kernel(%arg0: i32, %arg1: i32, %arg2: i32, %arg3: memref<8x128xf32, #tpu.memory_space<vmem>>, %arg4: memref<128x128xf32, #tpu.memory_space<vmem>>, %arg5: memref<1x128xf32, #tpu.memory_space<vmem>>, %arg6: memref<8x128xf32, #tpu.memory_space<vmem>>, %arg7: memref<8x128xf32, #tpu.memory_space<vmem>>) attributes {dimension_semantics = [#tpu.dimension_semantics<parallel>, #tpu.dimension_semantics<parallel>, #tpu.dimension_semantics<arbitrary>], iteration_bounds = array<i64: 1, 1, 1>, scalar_prefetch = 0 : i64, scratch_operands = 1 : i64, tpu.core_type = #tpu.core_type<tc>, window_params = [{transform_indices = @transform_0, window_bounds = array<i64: 8, 128>}, {transform_indices = @transform_1, window_bounds = array<i64: 128, 128>}, {transform_indices = @transform_2, window_bounds = array<i64: 1, 128>}, {transform_indices = @transform_3, window_bounds = array<i64: 8, 128>}]} {
    %c0_i32 = arith.constant 0 : i32
    %0 = arith.cmpi eq, %arg2, %c0_i32 : i32
    %1 = arith.extui %0 : i1 to i32
    %c0_i32_0 = arith.constant 0 : i32
    %2 = arith.cmpi ne, %1, %c0_i32_0 : i32
    scf.if %2 {
      %cst_10 = arith.constant 0.000000e+00 : f32
      %12 = vector.broadcast %cst_10 : f32 to vector<8x128xf32>
      %c0_11 = arith.constant 0 : index
      %c0_12 = arith.constant 0 : index
      %13 = vector.load %arg7[%c0_11, %c0_12] : memref<8x128xf32, #tpu.memory_space<vmem>>, vector<8x128xf32>
      tpu.vector_store %arg7[%c0_11, %c0_12], %12 {strides = array<i32>} : memref<8x128xf32, #tpu.memory_space<vmem>>, vector<8x128xf32>,
    } else {
    }
    %c0 = arith.constant 0 : index
    %c0_1 = arith.constant 0 : index
    %3 = vector.load %arg7[%c0, %c0_1] : memref<8x128xf32, #tpu.memory_space<vmem>>, vector<8x128xf32>
    %c0_2 = arith.constant 0 : index
    %c0_3 = arith.constant 0 : index
    %4 = vector.load %arg3[%c0_2, %c0_3] : memref<8x128xf32, #tpu.memory_space<vmem>>, vector<8x128xf32>
    %c0_4 = arith.constant 0 : index
    %c0_5 = arith.constant 0 : index
    %5 = vector.load %arg4[%c0_4, %c0_5] : memref<128x128xf32, #tpu.memory_space<vmem>>, vector<128x128xf32>
    %cst = arith.constant dense<0.000000e+00> : vector<8x128xf32>
    %6 = tpu.matmul %4, %5, %cst {dimension_numbers = #tpu.dot_dimension_numbers<[1], [0], [0], [1], [0, 0, 1, 1], [], []>} : vector<8x128xf32>, vector<128x128xf32>, vector<8x128xf32> -> vector<8x128xf32>
    %7 = arith.addf %3, %6 : vector<8x128xf32>
    %c0_6 = arith.constant 0 : index
    %c0_7 = arith.constant 0 : index
    %8 = vector.load %arg7[%c0_6, %c0_7] : memref<8x128xf32, #tpu.memory_space<vmem>>, vector<8x128xf32>
    tpu.vector_store %arg7[%c0_6, %c0_7], %7 {strides = array<i32>} : memref<8x128xf32, #tpu.memory_space<vmem>>, vector<8x128xf32>,
    %c0_i32_8 = arith.constant 0 : i32
    %9 = arith.cmpi eq, %arg2, %c0_i32_8 : i32
    %10 = arith.extui %9 : i1 to i32
    %c0_i32_9 = arith.constant 0 : i32
    %11 = arith.cmpi ne, %10, %c0_i32_9 : i32
    scf.if %11 {
      %c0_10 = arith.constant 0 : index
      %c0_11 = arith.constant 0 : index
      %12 = vector.load %arg7[%c0_10, %c0_11] : memref<8x128xf32, #tpu.memory_space<vmem>>, vector<8x128xf32>
      %c0_12 = arith.constant 0 : index
      %c0_13 = arith.constant 0 : index
      %13 = vector.load %arg5[%c0_12, %c0_13] : memref<1x128xf32, #tpu.memory_space<vmem>>, vector<1x128xf32>
      %14 = vector.broadcast %13 : vector<1x128xf32> to vector<8x128xf32>
      %15 = arith.addf %12, %14 : vector<8x128xf32>
      %cst_14 = arith.constant 0.000000e+00 : f32
      %16 = vector.broadcast %cst_14 : f32 to vector<8x128xf32>
      %17 = arith.maximumf %15, %16 : vector<8x128xf32>
      %c0_15 = arith.constant 0 : index
      %c0_16 = arith.constant 0 : index
      %18 = vector.load %arg6[%c0_15, %c0_16] : memref<8x128xf32, #tpu.memory_space<vmem>>, vector<8x128xf32>
      tpu.vector_store %arg6[%c0_15, %c0_16], %17 {strides = array<i32>} : memref<8x128xf32, #tpu.memory_space<vmem>>, vector<8x128xf32>,
    } else {
    }
    return
  }
  func.func @transform_0(%arg0: i32, %arg1: i32, %arg2: i32) -> (i32, i32) {
    %c0_i32 = arith.constant 0 : i32
    return %arg0, %arg2 : i32, i32
  }
  func.func @transform_1(%arg0: i32, %arg1: i32, %arg2: i32) -> (i32, i32) {
    %c0_i32 = arith.constant 0 : i32
    return %arg2, %arg1 : i32, i32
  }
  func.func @transform_2(%arg0: i32, %arg1: i32, %arg2: i32) -> (i32, i32) {
    %c0_i32 = arith.constant 0 : i32
    %c0_i32_0 = arith.constant 0 : i32
    return %c0_i32, %arg1 : i32, i32
  }
  func.func @transform_3(%arg0: i32, %arg1: i32, %arg2: i32) -> (i32, i32) {
    %c0_i32 = arith.constant 0 : i32
    return %arg0, %arg1 : i32, i32
  }
}

</mosaic_0001>

<bundles_post_ra>
// kernel: tpu_custom_call.1
= control target key start
LH: loop header
LB: loop body
LE: loop exit
PB: predicated region body
PF: predicated region fallthrough
CT: control target
= control target key end

     0   :  { %14 = vsyncpa [#allocation3], 0  ;;  %s546_s0 = inlined_call_operand.hbm [shape: f32[8,128], index: 0, kind: input, shape index: {}]   ;;  %s547_s1 = inlined_call_operand.hbm [shape: f32[128,128], index: 1, kind: input, shape index: {}]   ;;  %s548_s2 = inlined_call_operand.vmem [shape: f32[1,128], index: 2, kind: input, shape index: {}]   ;;  %s549_s3 = inlined_call_operand.hbm [shape: f32[128,128], index: 3, kind: input, shape index: {}]   ;;  %s550_s4 = inlined_call_operand.vmem [shape: f32[1,128], index: 4, kind: input, shape index: {}]   ;;  %s551_s5 = inlined_call_operand.hbm [shape: f32[128,128], index: 5, kind: input, shape index: {}]   ;;  %s552_s6 = inlined_call_operand.vmem [shape: f32[1,128], index: 6, kind: input, shape index: {}]   ;;  %s553_s7 = inlined_call_operand.hbm [shape: f32[128,128], index: 7, kind: input, shape index: {}]   ;;  %s554_s8 = inlined_call_operand.vmem [shape: f32[1,128], index: 8, kind: input, shape index: {}]   ;;  %s555_s9 = inlined_call_operand.hbm [shape: f32[8,128], index: 9, kind: output, shape index: {}]  }
   0x1   :  { %15 = vsyncpa [#allocation6], 0 }
   0x2   :  { %16 = vsyncpa [#allocation9], 0  ;;  %s33_s11 = sshll.u32 %s547_s1, 4  ;;  %s34_s11 = int_to_ptr.hbm [resolvable:$true] %s33_s11 }
   0x3   :  { %17 = vsyncpa [#allocation4], 0  ;;  %s458_s12 = smov [#allocation5]   ;;  %s63_s16 = sshll.u32 %s551_s5, 4  ;;  %s64_s16 = int_to_ptr.hbm [resolvable:$true] %s63_s16 }
   0x4   :  { %s35_s13 = sshll.u32 %s458_s12, 4  ;;  %s459_s17 = smov 128   ;;  %s36_s13 = int_to_ptr.vmem [resolvable:$true] %s35_s13 }
   0x5   :  { %s460_s18 = smov 8   ;;  %s461_s19 = smov [#allocation8]  }
   0x6   :  { %41 = dma.hbm_to_vmem [thread:$0]  %s34_s11, 2048, %s36_s13, [#allocation6], %s459_s17, %s459_s17, %s460_s18  }
   0x7   :  { %s65_s20 = sshll.u32 %s461_s19, 4  ;;  %s23_s23 = sshll.u32 %s546_s0, 4  ;;  %s66_s20 = int_to_ptr.vmem [resolvable:$true] %s65_s20  ;;  %s24_s23 = int_to_ptr.hbm [resolvable:$true] %s23_s23 }
   0x8   :  { %71 = dma.hbm_to_vmem [thread:$0]  %s64_s16, 2048, %s66_s20, [#allocation9], %s459_s17, %s459_s17, %s460_s18  }
   0x9   :  { %s48_s25 = sshll.u32 %s549_s3, 4  ;;  %s462_s26 = smov [#allocation2]   ;;  %s49_s25 = int_to_ptr.hbm [resolvable:$true] %s48_s25 }
   0xa   :  { %s25_s27 = sshll.u32 %s462_s26, 4  ;;  %s463_s5 = smov [#allocation7]   ;;  %s26_s27 = int_to_ptr.vmem [resolvable:$true] %s25_s27 }
   0xb   :  { %28 = dma.hbm_to_vmem [thread:$0]  %s24_s23, 128, %s26_s27, [#allocation3]  }
   0xc   :  { %s50_s28 = sshll.u32 %s463_s5, 4  ;;  %s78_s10 = sshll.u32 %s553_s7, 4  ;;  %s51_s28 = int_to_ptr.vmem [resolvable:$true] %s50_s28  ;;  %s79_s10 = int_to_ptr.hbm [resolvable:$true] %s78_s10 }
   0xd   :  { %56 = dma.hbm_to_vmem [thread:$0]  %s49_s25, 2048, %s51_s28, [#allocation6], %s459_s17, %s459_s17, %s460_s18  }
   0xe   :  { %s464_s0 = smov [#allocation10]  }
   0xf   :  { %s80_s11 = sshll.u32 %s464_s0, 4  ;;  %s81_s11 = int_to_ptr.vmem [resolvable:$true] %s80_s11 }
  0x10   :  { %86 = dma.hbm_to_vmem [thread:$0]  %s79_s10, 2048, %s81_s11, [#allocation9], %s459_s17, %s459_s17, %s460_s18  }
  0x11   :  { %450 = dma.done.wait [#allocation3], 128  }
  0x12   :  { %451 = vsyncadd [#allocation3], 4294967168 }
  0x13   :  { %452 = dma.done.wait [#allocation6], 4096  }
  0x14   :  { %453 = vsyncadd [#allocation6], 4294963200 }
  0x15   :  { %454 = dma.done.wait [#allocation9], 4096  }
  0x16   :  { %455 = vsyncadd [#allocation9], 4294963200  ;;  %v125_v0 = vld [vmem:[#allocation5 + $0x78] sm:$0xff]  ;;  %v124_v1 = vld [vmem:[#allocation5 + $0x70] sm:$0xff]  ;;  %s465_s16 = smov [#allocation11]   ;;  %s282_s20 = sshll.u32 %s555_s9, 4  ;;  %s283_s20 = int_to_ptr.hbm [resolvable:$true] %s282_s20 }
  0x17   :  { %130 = vmatpush.msra.mxu0 %v125_v0  ;;  %v123_v2 = vld [vmem:[#allocation5 + $0x68] sm:$0xff]  ;;  %v122_v3 = vld [vmem:[#allocation5 + $0x60] sm:$0xff]  ;;  %v166_v4 = vld [vmem:[#allocation7 + $0x78] sm:$0xff]  ;;  %s280_s17 = sshll.u32 %s465_s16, 4  ;;  %s281_s17 = int_to_ptr.vmem [resolvable:$true] %s280_s17 }
  0x18   :  { %v121_v5 = vld [vmem:[#allocation5 + $0x58] sm:$0xff]  ;;  %171 = vmatpush.msra.mxu1 %v166_v4  ;;  %v165_v6 = vld [vmem:[#allocation7 + $0x70] sm:$0xff]  ;;  %v164_v7 = vld [vmem:[#allocation7 + $0x68] sm:$0xff] }
  0x19   :  { %131 = vmatpush.msra.mxu0 %v124_v1  ;;  %v120_v8 = vld [vmem:[#allocation5 + $0x50] sm:$0xff]  ;;  %v163_v9 = vld [vmem:[#allocation7 + $0x60] sm:$0xff]  ;;  %v119_v10 = vld [vmem:[#allocation5 + $0x48] sm:$0xff] }
  0x1a   :  { %172 = vmatpush.msra.mxu1 %v165_v6  ;;  %v162_v11 = vld [vmem:[#allocation7 + $0x58] sm:$0xff]  ;;  %v118_v12 = vld [vmem:[#allocation5 + $0x40] sm:$0xff]  ;;  %v161_v13 = vld [vmem:[#allocation7 + $0x50] sm:$0xff] }
  0x1b   :  { %132 = vmatpush.msra.mxu0 %v123_v2  ;;  %v117_v14 = vld [vmem:[#allocation5 + $0x38] sm:$0xff]  ;;  %v160_v15 = vld [vmem:[#allocation7 + $0x48] sm:$0xff]  ;;  %v116_v16 = vld [vmem:[#allocation5 + $0x30] sm:$0xff] }
  0x1c   :  { %173 = vmatpush.msra.mxu1 %v164_v7  ;;  %v159_v17 = vld [vmem:[#allocation7 + $0x40] sm:$0xff]  ;;  %v115_v18 = vld [vmem:[#allocation5 + $0x28] sm:$0xff]  ;;  %v158_v19 = vld [vmem:[#allocation7 + $0x38] sm:$0xff] }
  0x1d   :  { %133 = vmatpush.msra.mxu0 %v122_v3  ;;  %v114_v20 = vld [vmem:[#allocation5 + $0x20] sm:$0xff]  ;;  %v157_v21 = vld [vmem:[#allocation7 + $0x30] sm:$0xff]  ;;  %v113_v22 = vld [vmem:[#allocation5 + $0x18] sm:$0xff] }
  0x1e   :  { %174 = vmatpush.msra.mxu1 %v163_v9  ;;  %v156_v23 = vld [vmem:[#allocation7 + $0x28] sm:$0xff]  ;;  %v112_v24 = vld [vmem:[#allocation5 + $0x10] sm:$0xff]  ;;  %v155_v25 = vld [vmem:[#allocation7 + $0x20] sm:$0xff] }
  0x1f   :  { %134 = vmatpush.msra.mxu0 %v121_v5  ;;  %v111_v26 = vld [vmem:[#allocation5 + $0x8] sm:$0xff]  ;;  %v154_v27 = vld [vmem:[#allocation7 + $0x18] sm:$0xff]  ;;  %v110_v28 = vld [vmem:[#allocation5] sm:$0xff] }
  0x20   :  { %175 = vmatpush.msra.mxu1 %v162_v11  ;;  %v109_v29 = vld [vmem:[#allocation2] sm:$0xff]  ;;  %v153_v30 = vld [vmem:[#allocation7 + $0x10] sm:$0xff]  ;;  %v152_v31 = vld [vmem:[#allocation7 + $0x8] sm:$0xff] }
  0x21   :  { %135 = vmatpush.msra.mxu0 %v120_v8  ;;  %v151_v32 = vld [vmem:[#allocation7] sm:$0xff]  ;;  %v207_v33 = vld [vmem:[#allocation8 + $0x78] sm:$0xff]  ;;  %v206_v34 = vld [vmem:[#allocation8 + $0x70] sm:$0xff] }
  0x22   :  { %176 = vmatpush.msra.mxu1 %v161_v13  ;;  %212 = vmatpush.msra.mxu2 %v207_v33  ;;  %v205_v35 = vld [vmem:[#allocation8 + $0x68] sm:$0xff]  ;;  %v204_v36 = vld [vmem:[#allocation8 + $0x60] sm:$0xff]  ;;  %v203_v37 = vld [vmem:[#allocation8 + $0x58] sm:$0xff] }
  0x23   :  { %136 = vmatpush.msra.mxu0 %v119_v10  ;;  %v202_v38 = vld [vmem:[#allocation8 + $0x50] sm:$0xff]  ;;  %v201_v39 = vld [vmem:[#allocation8 + $0x48] sm:$0xff]  ;;  %v200_v40 = vld [vmem:[#allocation8 + $0x40] sm:$0xff] }
  0x24   :  { %177 = vmatpush.msra.mxu1 %v160_v15  ;;  %213 = vmatpush.msra.mxu2 %v206_v34  ;;  %v199_v41 = vld [vmem:[#allocation8 + $0x38] sm:$0xff]  ;;  %v198_v42 = vld [vmem:[#allocation8 + $0x30] sm:$0xff]  ;;  %v197_v43 = vld [vmem:[#allocation8 + $0x28] sm:$0xff] }
  0x25   :  { %137 = vmatpush.msra.mxu0 %v118_v12  ;;  %v196_v44 = vld [vmem:[#allocation8 + $0x20] sm:$0xff]  ;;  %v195_v45 = vld [vmem:[#allocation8 + $0x18] sm:$0xff]  ;;  %v194_v50 = vld [vmem:[#allocation8 + $0x10] sm:$0xff] }
  0x26   :  { %178 = vmatpush.msra.mxu1 %v159_v17  ;;  %214 = vmatpush.msra.mxu2 %v205_v35  ;;  %v302_v46 = vld [vmem:[%s548_s2] ss:$0 sm:$0xff]  ;;  %v193_v51 = vld [vmem:[#allocation8 + $0x8] sm:$0xff]  ;;  %v192_v52 = vld [vmem:[#allocation8] sm:$0xff] }
  0x27   :  { %138 = vmatpush.msra.mxu0 %v117_v14  ;;  %v248_v53 = vld [vmem:[#allocation10 + $0x78] sm:$0xff]  ;;  %v247_v54 = vld [vmem:[#allocation10 + $0x70] sm:$0xff]  ;;  %v246_v55 = vld [vmem:[#allocation10 + $0x68] sm:$0xff] }
  0x28   :  { %179 = vmatpush.msra.mxu1 %v158_v19  ;;  %215 = vmatpush.msra.mxu2 %v204_v36  ;;  %v245_v56 = vld [vmem:[#allocation10 + $0x60] sm:$0xff]  ;;  %v244_v57 = vld [vmem:[#allocation10 + $0x58] sm:$0xff]  ;;  %v243_v58 = vld [vmem:[#allocation10 + $0x50] sm:$0xff] }
  0x29   :  { %139 = vmatpush.msra.mxu0 %v116_v16  ;;  %253 = vmatpush.msra.mxu3 %v248_v53  ;;  %v242_v59 = vld [vmem:[#allocation10 + $0x48] sm:$0xff]  ;;  %v241_v60 = vld [vmem:[#allocation10 + $0x40] sm:$0xff]  ;;  %v240_v61 = vld [vmem:[#allocation10 + $0x38] sm:$0xff] }
  0x2a   :  { %180 = vmatpush.msra.mxu1 %v157_v21  ;;  %216 = vmatpush.msra.mxu2 %v203_v37  ;;  %v239_v62 = vld [vmem:[#allocation10 + $0x30] sm:$0xff]  ;;  %v238_v63 = vld [vmem:[#allocation10 + $0x28] sm:$0xff]  ;;  %v237_v0 = vld [vmem:[#allocation10 + $0x20] sm:$0xff] }
  0x2b   :  { %140 = vmatpush.msra.mxu0 %v115_v18  ;;  %254 = vmatpush.msra.mxu3 %v247_v54  ;;  %v236_v1 = vld [vmem:[#allocation10 + $0x18] sm:$0xff]  ;;  %v235_v6 = vld [vmem:[#allocation10 + $0x10] sm:$0xff]  ;;  %v234_v7 = vld [vmem:[#allocation10 + $0x8] sm:$0xff] }
  0x2c   :  { %181 = vmatpush.msra.mxu1 %v156_v23  ;;  %217 = vmatpush.msra.mxu2 %v202_v38  ;;  %v303_v2 = vld [vmem:[%s550_s4] ss:$0 sm:$0xff]  ;;  %v233_v8 = vld [vmem:[#allocation10] sm:$0xff] }
  0x2d   :  { %141 = vmatpush.msra.mxu0 %v114_v20  ;;  %255 = vmatpush.msra.mxu3 %v246_v55  ;;  %v304_v9 = vld [vmem:[%s552_s6] ss:$0 sm:$0xff] }
  0x2e   :  { %182 = vmatpush.msra.mxu1 %v155_v25  ;;  %218 = vmatpush.msra.mxu2 %v201_v39  ;;  %v305_v13 = vld [vmem:[%s554_s8] ss:$0 sm:$0xff] }
  0x2f   :  { %142 = vmatpush.msra.mxu0 %v113_v22  ;;  %256 = vmatpush.msra.mxu3 %v245_v56 }
  0x30   :  { %183 = vmatpush.msra.mxu1 %v154_v27  ;;  %219 = vmatpush.msra.mxu2 %v200_v40 }
  0x31   :  { %143 = vmatpush.msra.mxu0 %v112_v24  ;;  %257 = vmatpush.msra.mxu3 %v244_v57 }
  0x32   :  { %184 = vmatpush.msra.mxu1 %v153_v30  ;;  %220 = vmatpush.msra.mxu2 %v199_v41 }
  0x33   :  { %144 = vmatpush.msra.mxu0 %v111_v26  ;;  %258 = vmatpush.msra.mxu3 %v243_v58 }
  0x34   :  { %185 = vmatpush.msra.mxu1 %v152_v31  ;;  %221 = vmatpush.msra.mxu2 %v198_v42 }
  0x35   :  { %145 = vmatpush.msra.mxu0 %v110_v28  ;;  %259 = vmatpush.msra.mxu3 %v242_v59 }
  0x36   :  { %146 = vmatmul.f32.vlgmr.msra.gmra.mxu0 %v109_v29  ;;  %186 = vmatpush.msra.mxu1 %v151_v32 }
  0x37   :  { %222 = vmatpush.msra.mxu2 %v197_v43  ;;  %260 = vmatpush.msra.mxu3 %v241_v60 }
  0x39   :  { %223 = vmatpush.msra.mxu2 %v196_v44  ;;  %261 = vmatpush.msra.mxu3 %v240_v61 }
  0x3b   :  { %224 = vmatpush.msra.mxu2 %v195_v45  ;;  %262 = vmatpush.msra.mxu3 %v239_v62 }
  0x3d   :  { %225 = vmatpush.msra.mxu2 %v194_v50  ;;  %263 = vmatpush.msra.mxu3 %v238_v63 }
  0x3f   :  { %226 = vmatpush.msra.mxu2 %v193_v51  ;;  %264 = vmatpush.msra.mxu3 %v237_v0 }
  0x41   :  { %227 = vmatpush.msra.mxu2 %v192_v52  ;;  %265 = vmatpush.msra.mxu3 %v236_v1 }
  0x43   :  { %266 = vmatpush.msra.mxu3 %v235_v6 }
  0x45   :  { %267 = vmatpush.msra.mxu3 %v234_v7 }
  0x47   :  { %268 = vmatpush.msra.mxu3 %v233_v8 }
  0xb3   :  { %v147_v47 = vpop.f32.mrf.mxu0 }
  0xb4   :  { %v148_v48 = vadd.f32 %v302_v46, %v147_v47 }
  0xb6   :  { %v150_v49 = vmax.f32 %v148_v48, 0.0 }
  0xb8   :  { %187 = vmatmul.f32.vlgmr.msra.gmra.mxu1 %v150_v49 }
 0x135   :  { %v188_v3 = vpop.f32.mrf.mxu1 }
 0x136   :  { %v189_v4 = vadd.f32 %v303_v2, %v188_v3 }
 0x138   :  { %v191_v5 = vmax.f32 %v189_v4, 0.0 }
 0x13a   :  { %228 = vmatmul.f32.vlgmr.msra.gmra.mxu2 %v191_v5 }
 0x1bd   :  { %v229_v10 = vpop.f32.mrf.mxu2 }
 0x1be   :  { %v230_v11 = vadd.f32 %v304_v9, %v229_v10 }
 0x1c0   :  { %v232_v12 = vmax.f32 %v230_v11, 0.0 }
 0x1c2   :  { %269 = vmatmul.f32.vlgmr.msra.gmra.mxu3 %v232_v12 }
 0x245   :  { %v270_v14 = vpop.f32.mrf.mxu3 }
 0x246   :  { %v271_v15 = vadd.f32 %v305_v13, %v270_v14 }
 0x248   :  { %v273_v16 = vmax.f32 %v271_v15, 0.0 }
 0x24a   :  { %274 = vst [vmem:[#allocation11] sm:$0xff] %v273_v16 }
 0x24b   :  { %285 = dma.vmem_to_hbm [thread:$0]  %s281_s17, 128, %s283_s20, [#allocation4]  }
 0x24c   :  { %456 = dma.done.wait [#allocation4], 128  }
 0x24d   :  { %457 = vsyncadd [#allocation4], 4294967168 }
 0x24e   :  { %290 = vsyncpa [#allocation3], 1 }
 0x24f   :  { %291 = vsyncpa [#allocation6], 1 }
 0x250   :  { %292 = vsyncpa [#allocation9], 1 }
 0x251   :  { %293 = vsyncpa [#allocation4], 1 }

// kernel: tpu_custom_call.1
= control target key start
LH: loop header
LB: loop body
LE: loop exit
PB: predicated region body
PF: predicated region fallthrough
CT: control target
= control target key end

     0   :  { %14 = vsyncpa [#allocation3], 0  ;;  %s546_s0 = inlined_call_operand.hbm [shape: f32[8,128], index: 0, kind: input, shape index: {}]   ;;  %s547_s1 = inlined_call_operand.hbm [shape: f32[128,128], index: 1, kind: input, shape index: {}]   ;;  %s548_s2 = inlined_call_operand.vmem [shape: f32[1,128], index: 2, kind: input, shape index: {}]   ;;  %s549_s3 = inlined_call_operand.hbm [shape: f32[128,128], index: 3, kind: input, shape index: {}]   ;;  %s550_s4 = inlined_call_operand.vmem [shape: f32[1,128], index: 4, kind: input, shape index: {}]   ;;  %s551_s5 = inlined_call_operand.hbm [shape: f32[128,128], index: 5, kind: input, shape index: {}]   ;;  %s552_s6 = inlined_call_operand.vmem [shape: f32[1,128], index: 6, kind: input, shape index: {}]   ;;  %s553_s7 = inlined_call_operand.hbm [shape: f32[128,128], index: 7, kind: input, shape index: {}]   ;;  %s554_s8 = inlined_call_operand.vmem [shape: f32[1,128], index: 8, kind: input, shape index: {}]   ;;  %s555_s9 = inlined_call_operand.hbm [shape: f32[8,128], index: 9, kind: output, shape index: {}]  }
   0x1   :  { %15 = vsyncpa [#allocation6], 0 }
   0x2   :  { %16 = vsyncpa [#allocation9], 0  ;;  %s33_s11 = sshll.u32 %s547_s1, 4  ;;  %s34_s11 = int_to_ptr.hbm [resolvable:$true] %s33_s11 }
   0x3   :  { %17 = vsyncpa [#allocation4], 0  ;;  %s458_s12 = smov [#allocation5]   ;;  %s63_s16 = sshll.u32 %s551_s5, 4  ;;  %s64_s16 = int_to_ptr.hbm [resolvable:$true] %s63_s16 }
   0x4   :  { %s35_s13 = sshll.u32 %s458_s12, 4  ;;  %s459_s17 = smov 128   ;;  %s36_s13 = int_to_ptr.vmem [resolvable:$true] %s35_s13 }
   0x5   :  { %s460_s18 = smov 8   ;;  %s461_s19 = smov [#allocation8]  }
   0x6   :  { %41 = dma.hbm_to_vmem [thread:$0]  %s34_s11, 2048, %s36_s13, [#allocation6], %s459_s17, %s459_s17, %s460_s18  }
   0x7   :  { %s65_s20 = sshll.u32 %s461_s19, 4  ;;  %s23_s23 = sshll.u32 %s546_s0, 4  ;;  %s66_s20 = int_to_ptr.vmem [resolvable:$true] %s65_s20  ;;  %s24_s23 = int_to_ptr.hbm [resolvable:$true] %s23_s23 }
   0x8   :  { %71 = dma.hbm_to_vmem [thread:$0]  %s64_s16, 2048, %s66_s20, [#allocation9], %s459_s17, %s459_s17, %s460_s18  }
   0x9   :  { %s48_s25 = sshll.u32 %s549_s3, 4  ;;  %s462_s26 = smov [#allocation2]   ;;  %s49_s25 = int_to_ptr.hbm [resolvable:$true] %s48_s25 }
   0xa   :  { %s25_s27 = sshll.u32 %s462_s26, 4  ;;  %s463_s5 = smov [#allocation7]   ;;  %s26_s27 = int_to_ptr.vmem [resolvable:$true] %s25_s27 }
   0xb   :  { %28 = dma.hbm_to_vmem [thread:$0]  %s24_s23, 128, %s26_s27, [#allocation3]  }
   0xc   :  { %s50_s28 = sshll.u32 %s463_s5, 4  ;;  %s78_s10 = sshll.u32 %s553_s7, 4  ;;  %s51_s28 = int_to_ptr.vmem [resolvable:$true] %s50_s28  ;;  %s79_s10 = int_to_ptr.hbm [resolvable:$true] %s78_s10 }
   0xd   :  { %56 = dma.hbm_to_vmem [thread:$0]  %s49_s25, 2048, %s51_s28, [#allocation6], %s459_s17, %s459_s17, %s460_s18  }
   0xe   :  { %s464_s0 = smov [#allocation10]  }
   0xf   :  { %s80_s11 = sshll.u32 %s464_s0, 4  ;;  %s81_s11 = int_to_ptr.vmem [resolvable:$true] %s80_s11 }
  0x10   :  { %86 = dma.hbm_to_vmem [thread:$0]  %s79_s10, 2048, %s81_s11, [#allocation9], %s459_s17, %s459_s17, %s460_s18  }
  0x11   :  { %450 = dma.done.wait [#allocation3], 128  }
  0x12   :  { %451 = vsyncadd [#allocation3], 4294967168 }
  0x13   :  { %452 = dma.done.wait [#allocation6], 4096  }
  0x14   :  { %453 = vsyncadd [#allocation6], 4294963200 }
  0x15   :  { %454 = dma.done.wait [#allocation9], 4096  }
  0x16   :  { %455 = vsyncadd [#allocation9], 4294963200  ;;  %v125_v0 = vld [vmem:[#allocation5 + $0x78] sm:$0xff]  ;;  %v124_v1 = vld [vmem:[#allocation5 + $0x70] sm:$0xff]  ;;  %s465_s16 = smov [#allocation11]   ;;  %s282_s20 = sshll.u32 %s555_s9, 4  ;;  %s283_s20 = int_to_ptr.hbm [resolvable:$true] %s282_s20 }
  0x17   :  { %130 = vmatpush.msra.mxu0 %v125_v0  ;;  %v123_v2 = vld [vmem:[#allocation5 + $0x68] sm:$0xff]  ;;  %v122_v3 = vld [vmem:[#allocation5 + $0x60] sm:$0xff]  ;;  %v166_v4 = vld [vmem:[#allocation7 + $0x78] sm:$0xff]  ;;  %s280_s17 = sshll.u32 %s465_s16, 4  ;;  %s281_s17 = int_to_ptr.vmem [resolvable:$true] %s280_s17 }
  0x18   :  { %v121_v5 = vld [vmem:[#allocation5 + $0x58] sm:$0xff]  ;;  %171 = vmatpush.msra.mxu1 %v166_v4  ;;  %v165_v6 = vld [vmem:[#allocation7 + $0x70] sm:$0xff]  ;;  %v164_v7 = vld [vmem:[#allocation7 + $0x68] sm:$0xff] }
  0x19   :  { %131 = vmatpush.msra.mxu0 %v124_v1  ;;  %v120_v8 = vld [vmem:[#allocation5 + $0x50] sm:$0xff]  ;;  %v163_v9 = vld [vmem:[#allocation7 + $0x60] sm:$0xff]  ;;  %v119_v10 = vld [vmem:[#allocation5 + $0x48] sm:$0xff] }
  0x1a   :  { %172 = vmatpush.msra.mxu1 %v165_v6  ;;  %v162_v11 = vld [vmem:[#allocation7 + $0x58] sm:$0xff]  ;;  %v118_v12 = vld [vmem:[#allocation5 + $0x40] sm:$0xff]  ;;  %v161_v13 = vld [vmem:[#allocation7 + $0x50] sm:$0xff] }
  0x1b   :  { %132 = vmatpush.msra.mxu0 %v123_v2  ;;  %v117_v14 = vld [vmem:[#allocation5 + $0x38] sm:$0xff]  ;;  %v160_v15 = vld [vmem:[#allocation7 + $0x48] sm:$0xff]  ;;  %v116_v16 = vld [vmem:[#allocation5 + $0x30] sm:$0xff] }
  0x1c   :  { %173 = vmatpush.msra.mxu1 %v164_v7  ;;  %v159_v17 = vld [vmem:[#allocation7 + $0x40] sm:$0xff]  ;;  %v115_v18 = vld [vmem:[#allocation5 + $0x28] sm:$0xff]  ;;  %v158_v19 = vld [vmem:[#allocation7 + $0x38] sm:$0xff] }
  0x1d   :  { %133 = vmatpush.msra.mxu0 %v122_v3  ;;  %v114_v20 = vld [vmem:[#allocation5 + $0x20] sm:$0xff]  ;;  %v157_v21 = vld [vmem:[#allocation7 + $0x30] sm:$0xff]  ;;  %v113_v22 = vld [vmem:[#allocation5 + $0x18] sm:$0xff] }
  0x1e   :  { %174 = vmatpush.msra.mxu1 %v163_v9  ;;  %v156_v23 = vld [vmem:[#allocation7 + $0x28] sm:$0xff]  ;;  %v112_v24 = vld [vmem:[#allocation5 + $0x10] sm:$0xff]  ;;  %v155_v25 = vld [vmem:[#allocation7 + $0x20] sm:$0xff] }
  0x1f   :  { %134 = vmatpush.msra.mxu0 %v121_v5  ;;  %v111_v26 = vld [vmem:[#allocation5 + $0x8] sm:$0xff]  ;;  %v154_v27 = vld [vmem:[#allocation7 + $0x18] sm:$0xff]  ;;  %v110_v28 = vld [vmem:[#allocation5] sm:$0xff] }
  0x20   :  { %175 = vmatpush.msra.mxu1 %v162_v11  ;;  %v109_v29 = vld [vmem:[#allocation2] sm:$0xff]  ;;  %v153_v30 = vld [vmem:[#allocation7 + $0x10] sm:$0xff]  ;;  %v152_v31 = vld [vmem:[#allocation7 + $0x8] sm:$0xff] }
  0x21   :  { %135 = vmatpush.msra.mxu0 %v120_v8  ;;  %v151_v32 = vld [vmem:[#allocation7] sm:$0xff]  ;;  %v207_v33 = vld [vmem:[#allocation8 + $0x78] sm:$0xff]  ;;  %v206_v34 = vld [vmem:[#allocation8 + $0x70] sm:$0xff] }
  0x22   :  { %176 = vmatpush.msra.mxu1 %v161_v13  ;;  %212 = vmatpush.msra.mxu2 %v207_v33  ;;  %v205_v35 = vld [vmem:[#allocation8 + $0x68] sm:$0xff]  ;;  %v204_v36 = vld [vmem:[#allocation8 + $0x60] sm:$0xff]  ;;  %v203_v37 = vld [vmem:[#allocation8 + $0x58] sm:$0xff] }
  0x23   :  { %136 = vmatpush.msra.mxu0 %v119_v10  ;;  %v202_v38 = vld [vmem:[#allocation8 + $0x50] sm:$0xff]  ;;  %v201_v39 = vld [vmem:[#allocation8 + $0x48] sm:$0xff]  ;;  %v200_v40 = vld [vmem:[#allocation8 + $0x40] sm:$0xff] }
  0x24   :  { %177 = vmatpush.msra.mxu1 %v160_v15  ;;  %213 = vmatpush.msra.mxu2 %v206_v34  ;;  %v199_v41 = vld [vmem:[#allocation8 + $0x38] sm:$0xff]  ;;  %v198_v42 = vld [vmem:[#allocation8 + $0x30] sm:$0xff]  ;;  %v197_v43 = vld [vmem:[#allocation8 + $0x28] sm:$0xff] }
  0x25   :  { %137 = vmatpush.msra.mxu0 %v118_v12  ;;  %v196_v44 = vld [vmem:[#allocation8 + $0x20] sm:$0xff]  ;;  %v195_v45 = vld [vmem:[#allocation8 + $0x18] sm:$0xff]  ;;  %v194_v50 = vld [vmem:[#allocation8 + $0x10] sm:$0xff] }
  0x26   :  { %178 = vmatpush.msra.mxu1 %v159_v17  ;;  %214 = vmatpush.msra.mxu2 %v205_v35  ;;  %v302_v46 = vld [vmem:[%s548_s2] ss:$0 sm:$0xff]  ;;  %v193_v51 = vld [vmem:[#allocation8 + $0x8] sm:$0xff]  ;;  %v192_v52 = vld [vmem:[#allocation8] sm:$0xff] }
  0x27   :  { %138 = vmatpush.msra.mxu0 %v117_v14  ;;  %v248_v53 = vld [vmem:[#allocation10 + $0x78] sm:$0xff]  ;;  %v247_v54 = vld [vmem:[#allocation10 + $0x70] sm:$0xff]  ;;  %v246_v55 = vld [vmem:[#allocation10 + $0x68] sm:$0xff] }
  0x28   :  { %179 = vmatpush.msra.mxu1 %v158_v19  ;;  %215 = vmatpush.msra.mxu2 %v204_v36  ;;  %v245_v56 = vld [vmem:[#allocation10 + $0x60] sm:$0xff]  ;;  %v244_v57 = vld [vmem:[#allocation10 + $0x58] sm:$0xff]  ;;  %v243_v58 = vld [vmem:[#allocation10 + $0x50] sm:$0xff] }
  0x29   :  { %139 = vmatpush.msra.mxu0 %v116_v16  ;;  %253 = vmatpush.msra.mxu3 %v248_v53  ;;  %v242_v59 = vld [vmem:[#allocation10 + $0x48] sm:$0xff]  ;;  %v241_v60 = vld [vmem:[#allocation10 + $0x40] sm:$0xff]  ;;  %v240_v61 = vld [vmem:[#allocation10 + $0x38] sm:$0xff] }
  0x2a   :  { %180 = vmatpush.msra.mxu1 %v157_v21  ;;  %216 = vmatpush.msra.mxu2 %v203_v37  ;;  %v239_v62 = vld [vmem:[#allocation10 + $0x30] sm:$0xff]  ;;  %v238_v63 = vld [vmem:[#allocation10 + $0x28] sm:$0xff]  ;;  %v237_v0 = vld [vmem:[#allocation10 + $0x20] sm:$0xff] }
  0x2b   :  { %140 = vmatpush.msra.mxu0 %v115_v18  ;;  %254 = vmatpush.msra.mxu3 %v247_v54  ;;  %v236_v1 = vld [vmem:[#allocation10 + $0x18] sm:$0xff]  ;;  %v235_v6 = vld [vmem:[#allocation10 + $0x10] sm:$0xff]  ;;  %v234_v7 = vld [vmem:[#allocation10 + $0x8] sm:$0xff] }
  0x2c   :  { %181 = vmatpush.msra.mxu1 %v156_v23  ;;  %217 = vmatpush.msra.mxu2 %v202_v38  ;;  %v303_v2 = vld [vmem:[%s550_s4] ss:$0 sm:$0xff]  ;;  %v233_v8 = vld [vmem:[#allocation10] sm:$0xff] }
  0x2d   :  { %141 = vmatpush.msra.mxu0 %v114_v20  ;;  %255 = vmatpush.msra.mxu3 %v246_v55  ;;  %v304_v9 = vld [vmem:[%s552_s6] ss:$0 sm:$0xff] }
  0x2e   :  { %182 = vmatpush.msra.mxu1 %v155_v25  ;;  %218 = vmatpush.msra.mxu2 %v201_v39  ;;  %v305_v13 = vld [vmem:[%s554_s8] ss:$0 sm:$0xff] }
  0x2f   :  { %142 = vmatpush.msra.mxu0 %v113_v22  ;;  %256 = vmatpush.msra.mxu3 %v245_v56 }
  0x30   :  { %183 = vmatpush.msra.mxu1 %v154_v27  ;;  %219 = vmatpush.msra.mxu2 %v200_v40 }
  0x31   :  { %143 = vmatpush.msra.mxu0 %v112_v24  ;;  %257 = vmatpush.msra.mxu3 %v244_v57 }
  0x32   :  { %184 = vmatpush.msra.mxu1 %v153_v30  ;;  %220 = vmatpush.msra.mxu2 %v199_v41 }
  0x33   :  { %144 = vmatpush.msra.mxu0 %v111_v26  ;;  %258 = vmatpush.msra.mxu3 %v243_v58 }
  0x34   :  { %185 = vmatpush.msra.mxu1 %v152_v31  ;;  %221 = vmatpush.msra.mxu2 %v198_v42 }
  0x35   :  { %145 = vmatpush.msra.mxu0 %v110_v28  ;;  %259 = vmatpush.msra.mxu3 %v242_v59 }
  0x36   :  { %146 = vmatmul.f32.vlgmr.msra.gmra.mxu0 %v109_v29  ;;  %186 = vmatpush.msra.mxu1 %v151_v32 }
  0x37   :  { %222 = vmatpush.msra.mxu2 %v197_v43  ;;  %260 = vmatpush.msra.mxu3 %v241_v60 }
  0x39   :  { %223 = vmatpush.msra.mxu2 %v196_v44  ;;  %261 = vmatpush.msra.mxu3 %v240_v61 }
  0x3b   :  { %224 = vmatpush.msra.mxu2 %v195_v45  ;;  %262 = vmatpush.msra.mxu3 %v239_v62 }
  0x3d   :  { %225 = vmatpush.msra.mxu2 %v194_v50  ;;  %263 = vmatpush.msra.mxu3 %v238_v63 }
  0x3f   :  { %226 = vmatpush.msra.mxu2 %v193_v51  ;;  %264 = vmatpush.msra.mxu3 %v237_v0 }
  0x41   :  { %227 = vmatpush.msra.mxu2 %v192_v52  ;;  %265 = vmatpush.msra.mxu3 %v236_v1 }
  0x43   :  { %266 = vmatpush.msra.mxu3 %v235_v6 }
  0x45   :  { %267 = vmatpush.msra.mxu3 %v234_v7 }
  0x47   :  { %268 = vmatpush.msra.mxu3 %v233_v8 }
  0xb3   :  { %v147_v47 = vpop.f32.mrf.mxu0 }
  0xb4   :  { %v148_v48 = vadd.f32 %v302_v46, %v147_v47 }
  0xb6   :  { %v150_v49 = vmax.f32 %v148_v48, 0.0 }
  0xb8   :  { %187 = vmatmul.f32.vlgmr.msra.gmra.mxu1 %v150_v49 }
 0x135   :  { %v188_v3 = vpop.f32.mrf.mxu1 }
 0x136   :  { %v189_v4 = vadd.f32 %v303_v2, %v188_v3 }
 0x138   :  { %v191_v5 = vmax.f32 %v189_v4, 0.0 }
 0x13a   :  { %228 = vmatmul.f32.vlgmr.msra.gmra.mxu2 %v191_v5 }
 0x1bd   :  { %v229_v10 = vpop.f32.mrf.mxu2 }
 0x1be   :  { %v230_v11 = vadd.f32 %v304_v9, %v229_v10 }
 0x1c0   :  { %v232_v12 = vmax.f32 %v230_v11, 0.0 }
 0x1c2   :  { %269 = vmatmul.f32.vlgmr.msra.gmra.mxu3 %v232_v12 }
 0x245   :  { %v270_v14 = vpop.f32.mrf.mxu3 }
 0x246   :  { %v271_v15 = vadd.f32 %v305_v13, %v270_v14 }
 0x248   :  { %v273_v16 = vmax.f32 %v271_v15, 0.0 }
 0x24a   :  { %274 = vst [vmem:[#allocation11] sm:$0xff] %v273_v16 }
 0x24b   :  { %285 = dma.vmem_to_hbm [thread:$0]  %s281_s17, 128, %s283_s20, [#allocation4]  }
 0x24c   :  { %456 = dma.done.wait [#allocation4], 128  }
 0x24d   :  { %457 = vsyncadd [#allocation4], 4294967168 }
 0x24e   :  { %290 = vsyncpa [#allocation3], 1 }
 0x24f   :  { %291 = vsyncpa [#allocation6], 1 }
 0x250   :  { %292 = vsyncpa [#allocation9], 1 }
 0x251   :  { %293 = vsyncpa [#allocation4], 1 }

// kernel: tpu_custom_call.1
= control target key start
LH: loop header
LB: loop body
LE: loop exit
PB: predicated region body
PF: predicated region fallthrough
CT: control target
= control target key end

     0   :  { %8 = vsyncpa [#allocation4], 0  ;;  %s240_s0 = inlined_call_operand.hbm [shape: f32[8,128], index: 0, kind: input, shape index: {}]   ;;  %s241_s1 = inlined_call_operand.hbm [shape: f32[128,128], index: 1, kind: input, shape index: {}]   ;;  %s242_s2 = inlined_call_operand.vmem [shape: f32[1,128], index: 2, kind: input, shape index: {}]   ;;  %s243_s3 = inlined_call_operand.hbm [shape: f32[8,128], index: 3, kind: output, shape index: {}]  }
   0x1   :  { %9 = vsyncpa [#allocation7], 0 }
   0x2   :  { %10 = vsyncpa [#allocation5], 0  ;;  %s16_s14 = sshll.u32 %s240_s0, 4  ;;  %s203_s15 = smov [#allocation3]   ;;  %s17_s14 = int_to_ptr.hbm [resolvable:$true] %s16_s14 }
   0x3   :  { %s18_s16 = sshll.u32 %s203_s15, 4  ;;  %s26_s19 = sshll.u32 %s241_s1, 4  ;;  %s19_s16 = int_to_ptr.vmem [resolvable:$true] %s18_s16  ;;  %s27_s19 = int_to_ptr.hbm [resolvable:$true] %s26_s19 }
   0x4   :  { %21 = dma.hbm_to_vmem [thread:$0]  %s17_s14, 128, %s19_s16, [#allocation4]  }
   0x5   :  { %s204_s20 = smov [#allocation6]   ;;  %s205_s22 = smov 128  }
   0x6   :  { %s28_s21 = sshll.u32 %s204_s20, 4  ;;  %s206_s23 = smov 8   ;;  %s29_s21 = int_to_ptr.vmem [resolvable:$true] %s28_s21 }
   0x7   :  { %34 = dma.hbm_to_vmem [thread:$0]  %s27_s19, 2048, %s29_s21, [#allocation7], %s205_s22, %s205_s22, %s206_s23  }
   0x8   :  { %197 = dma.done.wait [#allocation4], 128  }
   0x9   :  { %198 = vsyncadd [#allocation4], 4294967168 }
   0xa   :  { %199 = dma.done.wait [#allocation7], 2048  }
   0xb   :  { %200 = vsyncadd [#allocation7], 4294965248  ;;  %v67_v0 = vld [vmem:[#allocation6 + $0x78] sm:$0xff]  ;;  %v66_v1 = vld [vmem:[#allocation6 + $0x70] sm:$0xff]  ;;  %s207_s24 = smov [#allocation8]   ;;  %s108_s28 = sshll.u32 %s243_s3, 4  ;;  %s109_s28 = int_to_ptr.hbm [resolvable:$true] %s108_s28 }
   0xc   :  { %68 = vmatpush.msra.mxu0 %v67_v0  ;;  %v65_v2 = vld [vmem:[#allocation6 + $0x68] sm:$0xff]  ;;  %v64_v3 = vld [vmem:[#allocation6 + $0x60] sm:$0xff]  ;;  %v63_v4 = vld [vmem:[#allocation6 + $0x58] sm:$0xff]  ;;  %s106_s25 = sshll.u32 %s207_s24, 4  ;;  %s107_s25 = int_to_ptr.vmem [resolvable:$true] %s106_s25 }
   0xd   :  { %v62_v5 = vld [vmem:[#allocation6 + $0x50] sm:$0xff]  ;;  %v61_v6 = vld [vmem:[#allocation6 + $0x48] sm:$0xff]  ;;  %v60_v7 = vld [vmem:[#allocation6 + $0x40] sm:$0xff] }
   0xe   :  { %69 = vmatpush.msra.mxu0 %v66_v1  ;;  %v59_v8 = vld [vmem:[#allocation6 + $0x38] sm:$0xff]  ;;  %v58_v9 = vld [vmem:[#allocation6 + $0x30] sm:$0xff]  ;;  %v57_v10 = vld [vmem:[#allocation6 + $0x28] sm:$0xff] }
   0xf   :  { %v56_v11 = vld [vmem:[#allocation6 + $0x20] sm:$0xff]  ;;  %v55_v12 = vld [vmem:[#allocation6 + $0x18] sm:$0xff]  ;;  %v54_v13 = vld [vmem:[#allocation6 + $0x10] sm:$0xff] }
  0x10   :  { %70 = vmatpush.msra.mxu0 %v65_v2  ;;  %v53_v14 = vld [vmem:[#allocation6 + $0x8] sm:$0xff]  ;;  %v52_v15 = vld [vmem:[#allocation6] sm:$0xff]  ;;  %v51_v16 = vld [vmem:[#allocation3] sm:$0xff] }
  0x11   :  { %v124_v17 = vld [vmem:[%s242_s2] ss:$0 sm:$0xff] }
  0x12   :  { %71 = vmatpush.msra.mxu0 %v64_v3 }
  0x14   :  { %72 = vmatpush.msra.mxu0 %v63_v4 }
  0x16   :  { %73 = vmatpush.msra.mxu0 %v62_v5 }
  0x18   :  { %74 = vmatpush.msra.mxu0 %v61_v6 }
  0x1a   :  { %75 = vmatpush.msra.mxu0 %v60_v7 }
  0x1c   :  { %76 = vmatpush.msra.mxu0 %v59_v8 }
  0x1e   :  { %77 = vmatpush.msra.mxu0 %v58_v9 }
  0x20   :  { %78 = vmatpush.msra.mxu0 %v57_v10 }
  0x22   :  { %79 = vmatpush.msra.mxu0 %v56_v11 }
  0x24   :  { %80 = vmatpush.msra.mxu0 %v55_v12 }
  0x26   :  { %81 = vmatpush.msra.mxu0 %v54_v13 }
  0x28   :  { %82 = vmatpush.msra.mxu0 %v53_v14 }
  0x2a   :  { %83 = vmatpush.msra.mxu0 %v52_v15 }
  0x2b   :  { %84 = vmatmul.f32.vlgmr.msra.gmra.mxu0 %v51_v16 }
  0xa8   :  { %v85_v18 = vpop.f32.mrf.mxu0 }
  0xa9   :  { %v98_v19 = vadd.f32 %v124_v17, %v85_v18 }
  0xab   :  { %v99_v20 = vmax.f32 %v98_v19, 0.0 }
  0xad   :  { %100 = vst [vmem:[#allocation8] sm:$0xff] %v99_v20 }
  0xae   :  { %111 = dma.vmem_to_hbm [thread:$0]  %s107_s25, 128, %s109_s28, [#allocation5]  }
  0xaf   :  { %201 = dma.done.wait [#allocation5], 128  }
  0xb0   :  { %202 = vsyncadd [#allocation5], 4294967168 }
  0xb1   :  { %116 = vsyncpa [#allocation4], 1 }
  0xb2   :  { %117 = vsyncpa [#allocation7], 1 }
  0xb3   :  { %118 = vsyncpa [#allocation5], 1 }

</bundles_post_ra>
